<compile_context>
chip_gen: v6e
topology: v6e:2x2x1
jax: 0.10.0
libtpu: 0.0.40
codegen_flags: <defaults>
</compile_context>

<pallas_src>
import math
import functools

import jax
import jax.numpy as jnp
from jax.experimental import pallas as pl
from jax.experimental.pallas import tpu as pltpu


def _head_kernel(e_ref, wq_ref, wkv_ref, wc_ref, out_ref, *, cls_pos, scale, d_attn):
    """One grid step = one block of `block_b` batch elements.

    wq_ref : (d_in, dkv)       Wq^T zero-padded on the V lanes (dkv = d_attn + d_out)
    wkv_ref: (d_in, dkv)       [Wk^T | Wv^T]
    wc_ref : (dkv, n_classes)  Wc^T zero-padded on the K rows
    """
    e = e_ref[...]                                      # (Bt, T, d_in)
    bt, t, d_in = e.shape

    # Fused K/V projection for every token: one MXU matmul, M = Bt*T,
    # N = d_attn + d_out (lane-filling), f32 accumulation.
    e_flat = e.reshape(bt * t, d_in)                    # pure relayout when T % 8 == 0
    kv = jnp.dot(e_flat, wkv_ref[...], preferred_element_type=jnp.float32)
    kv3 = kv.reshape(bt, t, kv.shape[-1])               # (Bt, T, dkv)

    # Q only for the [CLS] position.  wq is zero on the V lanes, so q is
    # (Bt, dkv) with zeros wherever kv3 holds V -- the score reduction below
    # then contracts exactly q . k without slicing kv3 at a non-128 lane offset.
    e_cls = e[:, cls_pos, :]                            # (Bt, d_in)
    q = jnp.dot(e_cls, wq_ref[...], preferred_element_type=jnp.float32)
    if scale:
        q = q * (1.0 / math.sqrt(d_attn))

    # scores[b, t] = q[b] . k[b, t]  (VPU multiply + lane reduce).
    # TODO(synk): if profiling at large block_b*T shows VALU/XLU as the binding
    # slot, re-route these two contractions through the idle MXU via a
    # block-diagonal construction.
    scores = jnp.sum(q[:, None, :] * kv3, axis=-1)      # (Bt, T)

    # Numerically stable softmax over the key axis, f32 throughout; the
    # reciprocal goes to the otherwise-idle EUP slot.
    m = jnp.max(scores, axis=-1, keepdims=True)
    p = jnp.exp(scores - m)
    denom = jnp.sum(p, axis=-1, keepdims=True)
    attn = p * pl.reciprocal(denom, approx=True)        # (Bt, T)

    # cls_kv[b] = sum_t attn[b, t] * kv3[b, t]  (sublane reduce).  The K half
    # of cls_kv is unused, but wc is zero on those rows so the classifier
    # matmul drops it for free.
    cls_kv = jnp.sum(attn[:, :, None] * kv3, axis=1)    # (Bt, dkv)

    logits = jnp.dot(cls_kv, wc_ref[...], preferred_element_type=jnp.float32)
    out_ref[...] = logits.astype(out_ref.dtype)


def _vmem_capacity_bytes():
    """Physical VMEM of the current chip; conservative 64 MiB (v7x) fallback."""
    try:
        return int(pltpu.get_tpu_info().vmem_capacity_bytes)
    except Exception:
        return 64 << 20


def _estimate_vmem_bytes(block_b, T, d_in, dkv, num_classes, elsize, weight_bufs=2):
    e_blk = 2 * block_b * T * d_in * elsize                         # e, double-buffered
    weights = weight_bufs * (2 * d_in * dkv + dkv * num_classes) * elsize
    inter = 3 * block_b * T * dkv * 4                               # kv f32 + broadcast temps
    out = 2 * block_b * num_classes * 4
    small = 4 * block_b * (T + dkv) * 4
    return e_blk + weights + inter + out + small


def _pick_block_b(B, T, d_in, dkv, num_classes, elsize, budget_bytes):
    """Largest batch block that (a) divides B, (b) is a multiple of 8 (sublane of
    the f32 output block) or equal to B, and (c) fits the VMEM budget."""
    candidates = [d for d in range(B, 0, -1)
                  if B % d == 0 and (d % 8 == 0 or d == B)]
    for cand in candidates:
        if _estimate_vmem_bytes(cand, T, d_in, dkv, num_classes, elsize) <= budget_bytes:
            return cand
    return candidates[-1]   # smallest legal block; compiler reports if even this OOMs


def head_forward(e, wq_t, wk_t, wv_t, wc_t, *, cls_pos=0, scale=True,
                 block_b=None, mxu_dtype=None, single_buffer_weights=False):
    """e: (B, T, d_in); w*_t: (in_features, out_features) = nn.Linear weight^T.
    Returns (B, num_classes) float32.

    mxu_dtype: cast e + weights (jnp.bfloat16 recommended on v6e/v7x, also fine
      on v5e) to halve HBM->VMEM bytes and double the MXU rate; softmax and all
      accumulations stay float32.
    single_buffer_weights: on v7x (64 MiB VMEM) single-buffer the constant
      weight blocks so more VMEM is left for the streamed e block.
    """
    B, T, d_in = e.shape
    d_attn = wq_t.shape[1]
    d_out = wv_t.shape[1]
    num_classes = wc_t.shape[1]
    dkv = d_attn + d_out

    if mxu_dtype is not None:
        e = e.astype(mxu_dtype)
        wq_t, wk_t, wv_t, wc_t = (w.astype(mxu_dtype) for w in (wq_t, wk_t, wv_t, wc_t))
    elsize = jnp.dtype(e.dtype).itemsize

    # Fused / padded weights, built once in the wrapper (tiny):
    #   wq_pad: Wq^T with zero V-columns  -> q lives on the K lanes only.
    #   wkv   : [Wk^T | Wv^T]             -> single lane-filling projection matmul.
    #   wc_pad: Wc^T with zero K-rows     -> classifier ignores the K half.
    wq_pad = jnp.concatenate([wq_t, jnp.zeros((d_in, d_out), wq_t.dtype)], axis=1)
    wkv = jnp.concatenate([wk_t, wv_t], axis=1)
    wc_pad = jnp.concatenate([jnp.zeros((d_attn, num_classes), wc_t.dtype), wc_t], axis=0)

    physical_vmem = _vmem_capacity_bytes()
    budget = int(physical_vmem * 0.7)
    if block_b is None:
        block_b = _pick_block_b(B, T, d_in, dkv, num_classes, elsize, budget)
    assert B % block_b == 0 and (block_b % 8 == 0 or block_b == B), (B, block_b)

    # NOTE: if T is not a multiple of the sublane tile (8 for f32, 16 for bf16),
    # the in-kernel (Bt, T, d_in) -> (Bt*T, d_in) reshape materializes a copy;
    # pad T in the caller for large inputs.

    est = _estimate_vmem_bytes(block_b, T, d_in, dkv, num_classes, elsize,
                               weight_bufs=1 if single_buffer_weights else 2)
    cp_kwargs = dict(
        # Batch axis is independent work -> "parallel" lets the runtime shard it
        # across TensorCores when B // block_b >= 2.
        # TODO(synk): if an xprof trace on v7x shows only one TC busy, switch to
        # dimension_semantics=(pltpu.CORE_PARALLEL,).
        dimension_semantics=("parallel",),
    )
    if est > (16 << 20):   # above the most conservative default scoped-VMEM limit
        cp_kwargs["vmem_limit_bytes"] = min(int(est * 1.3), int(physical_vmem * 0.95))

    w_kwargs = {}
    if single_buffer_weights:
        w_kwargs["pipeline_mode"] = pl.Buffered(1)   # constant index_map -> 2nd buffer is waste

    kernel = functools.partial(_head_kernel, cls_pos=cls_pos, scale=scale, d_attn=d_attn)

    return pl.pallas_call(
        kernel,
        out_shape=jax.ShapeDtypeStruct((B, num_classes), jnp.float32),
        grid_spec=pltpu.PrefetchScalarGridSpec(
            num_scalar_prefetch=0,
            grid=(B // block_b,),
            in_specs=[
                pl.BlockSpec((block_b, T, d_in), lambda b: (b, 0, 0)),           # e
                pl.BlockSpec((d_in, dkv), lambda b: (0, 0), **w_kwargs),         # Wq^T (padded)
                pl.BlockSpec((d_in, dkv), lambda b: (0, 0), **w_kwargs),         # [Wk^T | Wv^T]
                pl.BlockSpec((dkv, num_classes), lambda b: (0, 0), **w_kwargs),  # Wc^T (padded)
            ],
            out_specs=pl.BlockSpec((block_b, num_classes), lambda b: (b, 0)),
        ),
        compiler_params=pltpu.CompilerParams(**cp_kwargs),
    )(e, wq_pad, wkv, wc_pad)


def reference_forward(e, wq_t, wk_t, wv_t, wc_t, *, cls_pos=0, scale=True):
    q = e @ wq_t
    k = e @ wk_t
    v = e @ wv_t
    scores = jnp.einsum("btd,bsd->bts", q, k)
    if scale:
        scores = scores / math.sqrt(q.shape[-1])
    attn = jax.nn.softmax(scores, axis=-1)
    values = jnp.einsum("bts,bsd->btd", attn, v)
    return values[:, cls_pos, :] @ wc_t


if __name__ == "__main__":
    keys = jax.random.split(jax.random.PRNGKey(0), 10)
    initrange = 0.1

    # --- Case 1: small f32 shapes consistent with the module's forward ---
    B, T, d_in, d_attn, d_out, num_classes = 2, 8, 32, 16, 16, 4
    e = jax.random.normal(keys[0], (B, T, d_in), dtype=jnp.float32)
    # nn.Linear stores weight as (out, in); the kernel takes the (in, out) transpose.
    wq_t = jax.random.uniform(keys[1], (d_in, d_attn), jnp.float32, -initrange, initrange)
    wk_t = jax.random.uniform(keys[2], (d_in, d_attn), jnp.float32, -initrange, initrange)
    wv_t = jax.random.uniform(keys[3], (d_in, d_out), jnp.float32, -initrange, initrange)
    wc_t = jax.random.uniform(keys[4], (d_out, num_classes), jnp.float32, -initrange, initrange)

    out = jax.block_until_ready(head_forward(e, wq_t, wk_t, wv_t, wc_t,
                                             cls_pos=0, scale=True))
    ref = reference_forward(e, wq_t, wk_t, wv_t, wc_t, cls_pos=0, scale=True)
    assert out.shape == (B, num_classes), out.shape
    # Tolerance accounts for the EUP approx reciprocal in the softmax denominator.
    assert jnp.allclose(out, ref, atol=1e-3, rtol=1e-3), (out, ref)

    # --- Case 2: larger shapes, bf16 MXU path, multiple-of-8 batch block ---
    B2, T2, d_in2, d_attn2, d_out2, nc2 = 16, 16, 128, 64, 64, 8
    e2 = jax.random.normal(keys[5], (B2, T2, d_in2), dtype=jnp.float32)
    wq2 = jax.random.uniform(keys[6], (d_in2, d_attn2), jnp.float32, -initrange, initrange)
    wk2 = jax.random.uniform(keys[7], (d_in2, d_attn2), jnp.float32, -initrange, initrange)
    wv2 = jax.random.uniform(keys[8], (d_in2, d_out2), jnp.float32, -initrange, initrange)
    wc2 = jax.random.uniform(keys[9], (d_out2, nc2), jnp.float32, -initrange, initrange)

    out2 = jax.block_until_ready(head_forward(e2, wq2, wk2, wv2, wc2, cls_pos=0,
                                              scale=True, mxu_dtype=jnp.bfloat16))
    # Reference on the same bf16-truncated inputs (kernel accumulates in f32).
    to32 = lambda x: x.astype(jnp.bfloat16).astype(jnp.float32)
    ref2 = reference_forward(to32(e2), to32(wq2), to32(wk2), to32(wv2), to32(wc2),
                             cls_pos=0, scale=True)
    assert out2.shape == (B2, nc2), out2.shape
    assert jnp.allclose(out2, ref2, atol=2e-2, rtol=2e-2), (out2, ref2)

    print("KERNEL_OK")
</pallas_src>

<mosaic_0001>
module attributes {stable_mosaic.version = 11 : i64} {
  func.func @_head_kernel(%arg0: i32, %arg1: memref<2x8x32xf32, #tpu.memory_space<vmem>>, %arg2: memref<32x32xf32, #tpu.memory_space<vmem>>, %arg3: memref<32x32xf32, #tpu.memory_space<vmem>>, %arg4: memref<32x4xf32, #tpu.memory_space<vmem>>, %arg5: memref<2x4xf32, #tpu.memory_space<vmem>>) attributes {dimension_semantics = [#tpu.dimension_semantics<parallel>], iteration_bounds = array<i64: 1>, scalar_prefetch = 0 : i64, scratch_operands = 0 : i64, tpu.core_type = #tpu.core_type<tc>, window_params = [{transform_indices = @transform_0, window_bounds = array<i64: 2, 8, 32>}, {pipeline_mode = #tpu.pipeline_mode<synchronous>, transform_indices = @transform_1, window_bounds = array<i64: 32, 32>}, {pipeline_mode = #tpu.pipeline_mode<synchronous>, transform_indices = @transform_2, window_bounds = array<i64: 32, 32>}, {pipeline_mode = #tpu.pipeline_mode<synchronous>, transform_indices = @transform_3, window_bounds = array<i64: 32, 4>}, {transform_indices = @transform_4, window_bounds = array<i64: 2, 4>}]} {
    %c0 = arith.constant 0 : index
    %c0_0 = arith.constant 0 : index
    %c0_1 = arith.constant 0 : index
    %0 = vector.load %arg1[%c0, %c0_0, %c0_1] : memref<2x8x32xf32, #tpu.memory_space<vmem>>, vector<2x8x32xf32>
    %1 = vector.shape_cast %0 : vector<2x8x32xf32> to vector<16x32xf32>
    %c0_2 = arith.constant 0 : index
    %c0_3 = arith.constant 0 : index
    %2 = vector.load %arg3[%c0_2, %c0_3] : memref<32x32xf32, #tpu.memory_space<vmem>>, vector<32x32xf32>
    %cst = arith.constant dense<0.000000e+00> : vector<16x32xf32>
    %3 = tpu.matmul %1, %2, %cst {dimension_numbers = #tpu.dot_dimension_numbers<[1], [0], [0], [1], [0, 0, 1, 1], [], []>} : vector<16x32xf32>, vector<32x32xf32>, vector<16x32xf32> -> vector<16x32xf32>
    %4 = vector.shape_cast %3 : vector<16x32xf32> to vector<2x8x32xf32>
    %5 = vector.extract_strided_slice %0 {offsets = [0, 0, 0], sizes = [2, 1, 32], strides = [1, 1, 1]} : vector<2x8x32xf32> to vector<2x1x32xf32>
    %6 = vector.shape_cast %5 : vector<2x1x32xf32> to vector<2x32xf32>
    %c0_4 = arith.constant 0 : index
    %c0_5 = arith.constant 0 : index
    %7 = vector.load %arg2[%c0_4, %c0_5] : memref<32x32xf32, #tpu.memory_space<vmem>>, vector<32x32xf32>
    %cst_6 = arith.constant dense<0.000000e+00> : vector<2x32xf32>
    %8 = tpu.matmul %6, %7, %cst_6 {dimension_numbers = #tpu.dot_dimension_numbers<[1], [0], [0], [1], [0, 0, 1, 1], [], []>} : vector<2x32xf32>, vector<32x32xf32>, vector<2x32xf32> -> vector<2x32xf32>
    %cst_7 = arith.constant 2.500000e-01 : f32
    %9 = vector.broadcast %cst_7 : f32 to vector<2x32xf32>
    %10 = arith.mulf %8, %9 : vector<2x32xf32>
    %11 = vector.shape_cast %10 : vector<2x32xf32> to vector<2x1x32xf32>
    %12 = vector.broadcast %11 : vector<2x1x32xf32> to vector<2x8x32xf32>
    %13 = arith.mulf %12, %4 : vector<2x8x32xf32>
    %cst_8 = arith.constant dense<0.000000e+00> : vector<2x8xf32>
    %14 = vector.multi_reduction <add>, %13, %cst_8 [2] : vector<2x8x32xf32> to vector<2x8xf32>
    %cst_9 = arith.constant dense<0xFF800000> : vector<2xf32>
    %15 = vector.multi_reduction <maximumf>, %14, %cst_9 [1] : vector<2x8xf32> to vector<2xf32>
    %16 = vector.shape_cast %15 : vector<2xf32> to vector<2x1xf32>
    %17 = vector.broadcast %16 : vector<2x1xf32> to vector<2x8xf32>
    %18 = arith.subf %14, %17 : vector<2x8xf32>
    %19 = math.exp %18 : vector<2x8xf32>
    %cst_10 = arith.constant dense<0.000000e+00> : vector<2xf32>
    %20 = vector.multi_reduction <add>, %19, %cst_10 [1] : vector<2x8xf32> to vector<2xf32>
    %21 = vector.shape_cast %20 : vector<2xf32> to vector<2x1xf32>
    %22 = tpu.reciprocal %21 {approx = true} : vector<2x1xf32> -> vector<2x1xf32>
    %23 = vector.broadcast %22 : vector<2x1xf32> to vector<2x8xf32>
    %24 = arith.mulf %19, %23 : vector<2x8xf32>
    %25 = vector.shape_cast %24 : vector<2x8xf32> to vector<2x8x1xf32>
    %26 = vector.broadcast %25 : vector<2x8x1xf32> to vector<2x8x32xf32>
    %27 = arith.mulf %26, %4 : vector<2x8x32xf32>
    %cst_11 = arith.constant dense<0.000000e+00> : vector<2x32xf32>
    %28 = vector.multi_reduction <add>, %27, %cst_11 [1] : vector<2x8x32xf32> to vector<2x32xf32>
    %c0_12 = arith.constant 0 : index
    %c0_13 = arith.constant 0 : index
    %29 = vector.load %arg4[%c0_12, %c0_13] : memref<32x4xf32, #tpu.memory_space<vmem>>, vector<32x4xf32>
    %cst_14 = arith.constant dense<0.000000e+00> : vector<2x4xf32>
    %30 = tpu.matmul %28, %29, %cst_14 {dimension_numbers = #tpu.dot_dimension_numbers<[1], [0], [0], [1], [0, 0, 1, 1], [], []>} : vector<2x32xf32>, vector<32x4xf32>, vector<2x4xf32> -> vector<2x4xf32>
    %c0_15 = arith.constant 0 : index
    %c0_16 = arith.constant 0 : index
    %31 = vector.load %arg5[%c0_15, %c0_16] : memref<2x4xf32, #tpu.memory_space<vmem>>, vector<2x4xf32>
    tpu.vector_store %arg5[%c0_15, %c0_16], %30 {strides = array<i32>} : memref<2x4xf32, #tpu.memory_space<vmem>>, vector<2x4xf32>,
    return
  }
  func.func @transform_0(%arg0: i32) -> (i32, i32, i32) {
    %c0_i32 = arith.constant 0 : i32
    %c0_i32_0 = arith.constant 0 : i32
    %c0_i32_1 = arith.constant 0 : i32
    return %arg0, %c0_i32, %c0_i32_0 : i32, i32, i32
  }
  func.func @transform_1(%arg0: i32) -> (i32, i32) {
    %c0_i32 = arith.constant 0 : i32
    %c0_i32_0 = arith.constant 0 : i32
    %c0_i32_1 = arith.constant 0 : i32
    return %c0_i32, %c0_i32_0 : i32, i32
  }
  func.func @transform_2(%arg0: i32) -> (i32, i32) {
    %c0_i32 = arith.constant 0 : i32
    %c0_i32_0 = arith.constant 0 : i32
    %c0_i32_1 = arith.constant 0 : i32
    return %c0_i32, %c0_i32_0 : i32, i32
  }
  func.func @transform_3(%arg0: i32) -> (i32, i32) {
    %c0_i32 = arith.constant 0 : i32
    %c0_i32_0 = arith.constant 0 : i32
    %c0_i32_1 = arith.constant 0 : i32
    return %c0_i32, %c0_i32_0 : i32, i32
  }
  func.func @transform_4(%arg0: i32) -> (i32, i32) {
    %c0_i32 = arith.constant 0 : i32
    %c0_i32_0 = arith.constant 0 : i32
    return %arg0, %c0_i32 : i32, i32
  }
}

</mosaic_0001>

<bundles_post_ra>
// kernel: tpu_custom_call.1
= control target key start
LH: loop header
LB: loop body
LE: loop exit
PB: predicated region body
PF: predicated region fallthrough
CT: control target
= control target key end

     0   :  { %9 = vsyncpa [#allocation3], 0  ;;  %s685_s0 = inlined_call_operand.hbm [shape: f32[2,8,32], index: 0, kind: input, shape index: {}]   ;;  %s686_s1 = inlined_call_operand.vmem [shape: f32[32,32], index: 1, kind: input, shape index: {}]   ;;  %s687_s2 = inlined_call_operand.hbm [shape: f32[32,32], index: 2, kind: input, shape index: {}]   ;;  %s688_s3 = inlined_call_operand.vmem [shape: f32[32,4], index: 3, kind: input, shape index: {}]   ;;  %s689_s4 = inlined_call_operand.hbm [shape: f32[2,4], index: 4, kind: output, shape index: {}]  }
   0x1   :  { %10 = vsyncpa [#allocation6], 0 }
   0x2   :  { %11 = vsyncpa [#allocation4], 0  ;;  %s584_s15 = smov [#allocation2]  }
   0x3   :  { %s17_s16 = sshll.u32 %s584_s15, 4  ;;  %s18_s16 = int_to_ptr.vmem [resolvable:$true] %s17_s16 }
   0x4   :  { %s526_s17 = scalar_lea.vmem %s18_s16, 256  ;;  %p531_p1 = scmp.lt.s32.totalorder %s18_s16, %s18_s16 }
   0x5   :  { %p527_p0 = scmp.ne.s32.totalorder %s18_s16, %s526_s17  ;;  %p532_p2 = scmp.lt.s32.totalorder %s526_s17, %s526_s17 }
   0x7   :  { %p533_p3 = por %p532_p2, %p531_p1 }
   0x9   :  { %p534_p4 = pnand %p533_p3, %p527_p0 }
   0xb   :  { %537 = shalt.err (!%p534_p4)
}
   0xc   :  { %s585_s18 = smov 128   ;;  %s586_s19 = smov 8  }
   0xd   :  { %23 = dma.hbm_to_vmem [thread:$0]  %s685_s0, 256, %s18_s16, [#allocation3], %s585_s18, %s585_s18, %s586_s19  }
   0xe   :  { %s587_s22 = smov [#allocation5]  }
   0xf   :  { %s31_s23 = sshll.u32 %s587_s22, 4  ;;  %s32_s23 = int_to_ptr.vmem [resolvable:$true] %s31_s23 }
  0x10   :  { %s546_s24 = scalar_lea.vmem %s32_s23, 512  ;;  %p551_p6 = scmp.lt.s32.totalorder %s32_s23, %s32_s23 }
  0x11   :  { %p547_p5 = scmp.ne.s32.totalorder %s32_s23, %s546_s24  ;;  %p552_p7 = scmp.lt.s32.totalorder %s546_s24, %s546_s24 }
  0x13   :  { %p553_p8 = por %p552_p7, %p551_p6 }
  0x15   :  { %p554_p9 = pnand %p553_p8, %p547_p5 }
  0x17   :  { %557 = shalt.err (!%p554_p9)
}
  0x18   :  { %37 = dma.hbm_to_vmem [thread:$0]  %s687_s2, 512, %s32_s23, [#allocation6], %s585_s18, %s585_s18, %s586_s19  }
  0x19   :  { %578 = dma.done.wait [#allocation3], 256  }
  0x1a   :  { %579 = vsyncadd [#allocation3], 4294967040 }
  0x1b   :  { %580 = dma.done.wait [#allocation6], 512  }
  0x1c   :  { %581 = vsyncadd [#allocation6], 4294966784  ;;  %v588_v0 = vmov 0.0   ;;  %vm589_vm0 = vmmov 0   ;;  %v137_v1 = vld [vmem:[%s686_s1 + $0x18] sm:$0xff]  ;;  %v136_v2 = vld [vmem:[%s686_s1 + $0x10] sm:$0xff]  ;;  %v218_v15 = vlaneseq }
  0x1d   :  { %479 = vmatprep.subr.mxu1 %v588_v0  ;;  %487 = vmatprep.mubr.msk.f32.mxu1 %vm589_vm0, %v588_v0  ;;  %v51_v3 = vld [vmem:[#allocation5 + $0x18] sm:$0xff]  ;;  %v50_v5 = vld [vmem:[#allocation5 + $0x10] sm:$0xff]  ;;  %v49_v6 = vld [vmem:[#allocation5 + $0x8] sm:$0xff]  ;;  %vm139_vm1 = vcmask 1041409   ;;  %vm52_vm2 = vcmask 261120   ;;  %vm269_vm3 = vcmask 58368  }
  0x1e   :  { %480 = vmatpush3.msra.mxu1 %v137_v1  ;;  %468 = vmatprep.subr.mxu0 %v51_v3  ;;  %v135_v4 = vld [vmem:[%s686_s1 + $0x8] sm:$0xff]  ;;  %v46_v7 = vld [vmem:[#allocation2] sm:$0xff]  ;;  %v48_v11 = vld [vmem:[#allocation5] sm:$0xff]  ;;  %v590_v13 = vmov 1966171168   ;;  %v219_v17 = vshrl.u32 %v218_v15, 7 }
  0x1f   :  { %481 = vmatprep.subr.mxu1 %v588_v0  ;;  %469 = vmatpush3.msra.mxu0 %v51_v3  ;;  %v47_v8 = vld [vmem:[#allocation2 + $0x8] sm:$0xff]  ;;  %v134_v10 = vld [vmem:[%s686_s1] sm:$0xff]  ;;  %v216_v14 = vunpack.c.l.s4 %v590_v13  ;;  %v258_v35 = vand.u32 127, %v218_v15  ;;  %v591_v43 = vmov 0   ;;  %v354_v3 = vld [vmem:[%s688_s3 + $0x18] sm:$0xff]  ;;  %vm430_vm4 = vcmask 25600  }
  0x20   :  { %482 = vmatpush3.msra.mxu1 %v136_v2  ;;  %470 = vmatprep.subr.mxu0 %v50_v5  ;;  %v138_v9 = vrot.slane %v47_v8, 7  ;;  %v239_v23 = vsub.s32 0, %v219_v17  ;;  %v280_v44 = vsub.s32 1, %v219_v17 }
  0x21   :  { %483 = vmatprep.subr.mxu1 %v588_v0  ;;  %471 = vmatpush3.msra.mxu0 %v50_v5  ;;  %v217_v16 = vunpack.c.0.s8 %v216_v14  ;;  %v261_v37 = vsub.s32 %v258_v35, %v219_v17  ;;  %v352_v5 = vld [vmem:[%s688_s3 + $0x8] sm:$0xff] }
  0x22   :  { %484 = vmatpush3.msra.mxu1 %v135_v4  ;;  %472 = vmatprep.subr.mxu0 %v49_v6  ;;  %v140_v12 = vsel %vm139_vm1, %v138_v9, %v46_v7  ;;  %v353_v4 = vld [vmem:[%s688_s3 + $0x10] sm:$0xff] }
  0x23   :  { %485 = vmatprep.subr.mxu1 %v588_v0  ;;  %473 = vmatpush3.msra.mxu0 %v49_v6  ;;  %v220_v18 = vsub.s32 %v217_v16, %v219_v17  ;;  %v351_v6 = vld [vmem:[%s688_s3] sm:$0xff]  ;;  %s592_s3 = smov [#allocation7]  }
  0x24   :  { %486 = vmatpush3.msra.mxu1 %v134_v10  ;;  %474 = vmatprep.subr.mxu0 %v48_v11  ;;  %s438_s14 = sshll.u32 %s592_s3, 4  ;;  %s439_s14 = int_to_ptr.vmem [resolvable:$true] %s438_s14 }
  0x25   :  { %488 = vmatmul.mubr.msk.f32.vlgmr.msra.gmra.mxu1 %vm52_vm2, %v140_v12  ;;  %475 = vmatpush3.msra.mxu0 %v48_v11  ;;  %s558_s15 = scalar_lea.vmem %s439_s14, 32  ;;  %p563_p11 = scmp.lt.s32.totalorder %s439_s14, %s439_s14 }
  0x26   :  { %476 = vmatprep.mubr.msk.f32.mxu0 %vm52_vm2, %v46_v7  ;;  %490 = vmatprep.subr.mxu0 %v588_v0  ;;  %p559_p10 = scmp.ne.s32.totalorder %s439_s14, %s558_s15  ;;  %p564_p12 = scmp.lt.s32.totalorder %s558_s15, %s558_s15 }
  0x27   :  { %477 = vmatmul.mubr.msk.f32.vlgmr.msra.gmra.mxu0 %vm52_vm2, %v47_v8  ;;  %511 = vset.pattern.permute.xlu0 %v591_v43 }
  0x28   :  { %498 = vmatprep.mubr.msk.f32.mxu0 %vm589_vm0, %v588_v0  ;;  %510 = vset.pattern.permute.xlu1 %v591_v43  ;;  %p565_p13 = por %p564_p12, %p563_p11 }
  0x29   :  { %491 = vmatpush3.msra.mxu0 %v354_v3 }
  0x2a   :  { %492 = vmatprep.subr.mxu0 %v588_v0  ;;  %p566_p0 = pnand %p565_p13, %p559_p10 }
  0x2b   :  { %493 = vmatpush3.msra.mxu0 %v353_v4 }
  0x2c   :  { %494 = vmatprep.subr.mxu0 %v588_v0 }
  0x2d   :  { %495 = vmatpush3.msra.mxu0 %v352_v5 }
  0x2e   :  { %496 = vmatprep.subr.mxu0 %v588_v0 }
  0x2f   :  { %497 = vmatpush3.msra.mxu0 %v351_v6 }
  0xe5   :  { %v209_v19 = vpop.f32.mrf.mxu1 }
  0xe6   :  { %v213_v20 = vmul.f32 0.25, %v209_v19 }
  0xe7   :  { %v489_v21 = vpop.f32.mrf.mxu1  ;;  %v649_v24 = vpop.f32.mrf.mxu0 }
  0xe8   :  { %v221_v22 = vrot.slane %v213_v20, %v220_v18 }
  0xe9   :  { %v651_v29 = vpop.f32.mrf.mxu0 }
  0xea   :  { %v222_v25 = vcombine.high %v221_v22, %v221_v22  ;;  %v229_v26 = vrot.slane %v221_v22, %v220_v18 }
  0xec   :  { %v236_v27 = vrot.slane %v222_v25, %v220_v18  ;;  %v240_v28 = vrot.slane %v229_v26, %v239_v23 }
  0xee   :  { %v244_v30 = vrot.slane %v236_v27, %v239_v23  ;;  %v247_v31 = vmul.f32 %v240_v28, %v651_v29 }
  0xf0   :  { %v248_v32 = vmul.f32 %v649_v24, %v244_v30  ;;  %v249_v33 = vsel %vm52_vm2, %v247_v31, 0.0 }
  0xf1   :  { %250 = vadd.xlane.f32.xlu0 %v249_v33 }
  0xf2   :  { %v252_v34 = vsel %vm52_vm2, %v248_v32, 0.0 }
  0xf5   :  { %253 = vadd.xlane.f32.xlu0 %v252_v34 }
 0x17a   :  { %v251_v36 = vpop.xlane.xlu0 %250 }
 0x17b   :  { %v262_v39 = vrot.slane %v251_v36, %v261_v37 }
 0x17e   :  { %v254_v38 = vpop.xlane.xlu0 %253 }
 0x17f   :  { %v266_v40 = vrot.slane %v254_v38, %v261_v37 }
 0x181   :  { %v267_v41 = vsel %vm139_vm1, %v266_v40, %v262_v39 }
 0x182   :  { %v270_v42 = vsel %vm269_vm3, %v267_v41, -inf }
 0x183   :  { %271 = vmax.xlane.f32.xlu1 %v270_v42 }
 0x20c   :  { %v272_v45 = vpop.xlane.xlu1 %271 }
 0x20d   :  { %v277_v46 = vrot.slane %v272_v45, %v239_v23  ;;  %v281_v47 = vrot.slane %v272_v45, %v280_v44 }
 0x20f   :  { %v284_v48 = vsub.f32 %v251_v36, %v277_v46  ;;  %v285_v49 = vsub.f32 %v254_v38, %v281_v47 }
 0x211   :  { %v286_v50 = vmul.f32 1.442695, %v284_v48  ;;  %v288_v51 = vmul.f32 1.442695, %v285_v49 }
 0x213   :  { %512 = vpow2.f32 %v286_v50 }
 0x214   :  { %514 = vpow2.f32 %v288_v51 }
 0x220   :  { %v513_v52 = vpop.eup %512 }
 0x221   :  { %v515_v53 = vpop.eup %514  ;;  %293 = vperm.xlu1 %510, %v513_v52  }
 0x222   :  { %296 = vperm.xlu0 %511, %v515_v53  }
 0x29c   :  { %v294_v54 = vpop.permute.xlu1 %293 }
 0x29d   :  { %v297_v55 = vpop.permute.xlu0 %296  ;;  %v301_v56 = vrot.slane %v294_v54, %v261_v37 }
 0x29e   :  { %v305_v57 = vrot.slane %v297_v55, %v261_v37 }
 0x2a0   :  { %v306_v58 = vsel %vm139_vm1, %v305_v57, %v301_v56 }
 0x2a1   :  { %v308_v59 = vsel %vm269_vm3, %v306_v58, 0.0 }
 0x2a2   :  { %309 = vadd.xlane.f32.xlu1 %v308_v59 }
 0x32b   :  { %v310_v60 = vpop.xlane.xlu1 %309 }
 0x32c   :  { %516 = vrcp.f32 %v310_v60 }
 0x339   :  { %v517_v61 = vpop.eup %516 }
 0x33a   :  { %v316_v62 = vrot.slane %v517_v61, %v239_v23  ;;  %v320_v1 = vrot.slane %v517_v61, %v280_v44 }
 0x33c   :  { %v323_v63 = vmul.f32 %v513_v52, %v316_v62  ;;  %v324_v2 = vmul.f32 %v515_v53, %v320_v1 }
 0x33e   :  { %327 = vperm.xlu0 %511, %v323_v63  }
 0x342   :  { %332 = vperm.xlu0 %511, %v324_v2  }
 0x3b9   :  { %v328_v7 = vpop.permute.xlu0 %327 }
 0x3ba   :  { %v335_v8 = vmul.f32 %v328_v7, %v651_v29 }
 0x3bc   :  { %v337_v9 = vsel %vm52_vm2, %v335_v8, 0.0 }
 0x3bd   :  { %v338_v10 = vrot.slane %v337_v9, 4  ;;  %v333_v11 = vpop.permute.xlu0 %332 }
 0x3be   :  { %v336_v12 = vmul.f32 %v649_v24, %v333_v11 }
 0x3bf   :  { %v339_v13 = vadd.f32 %v338_v10, %v337_v9 }
 0x3c0   :  { %v344_v14 = vsel %vm52_vm2, %v336_v12, 0.0 }
 0x3c1   :  { %v340_v15 = vrot.slane %v339_v13, 2  ;;  %v345_v16 = vrot.slane %v344_v14, 4 }
 0x3c3   :  { %v341_v17 = vadd.f32 %v340_v15, %v339_v13  ;;  %v346_v18 = vadd.f32 %v345_v16, %v344_v14 }
 0x3c5   :  { %v347_v19 = vrot.slane %v346_v18, 2  ;;  %v342_v20 = vrot.slane %v341_v17, 1 }
 0x3c7   :  { %v348_v0 = vadd.f32 %v347_v19, %v346_v18  ;;  %v343_v22 = vadd.f32 %v342_v20, %v341_v17 }
 0x3c9   :  { %v349_v21 = vrot.slane %v348_v0, 1 }
 0x3cb   :  { %v350_v23 = vadd.f32 %v349_v21, %v348_v0 }
 0x3cd   :  { %v357_v25 = vsel %vm139_vm1, %v350_v23, %v343_v22 }
 0x3ce   :  { %499 = vmatmul.mubr.msk.f32.vlgmr.msra.gmra.mxu0 %vm52_vm2, %v357_v25 }
 0x48e   :  { %v426_v24 = vpop.f32.mrf.mxu0 }
 0x48f   :  { %431 = vst.msk [vmem:[#allocation7] sm:$0x3] %vm430_vm4, %v426_v24 }
 0x490   :  { %v500_v26 = vpop.f32.mrf.mxu0 }
 0x491   :  { %569 = shalt.err (!%p566_p0)
}
 0x492   :  { %441 = dma.vmem_to_hbm [thread:$0]  %s439_s14, 32, %s689_s4, [#allocation4]  }
 0x493   :  { %582 = dma.done.wait [#allocation4], 32  }
 0x494   :  { %583 = vsyncadd [#allocation4], 4294967264 }
 0x495   :  { %445 = vsyncpa [#allocation3], 1 }
 0x496   :  { %446 = vsyncpa [#allocation6], 1 }
 0x497   :  { %447 = vsyncpa [#allocation4], 1 }

</bundles_post_ra>
